<compile_context>
chip_gen: v7x
topology: tpu7x:2x2x1
jax: 0.10.0
libtpu: 0.0.40
codegen_flags: <defaults>
</compile_context>

<pallas_src>
import functools

import jax
import jax.numpy as jnp
from jax.experimental import pallas as pl
from jax.experimental.pallas import tpu as pltpu  # noqa: F401  (TPU backend)


def _round_up(n, m):
    return ((n + m - 1) // m) * m


def spectral_mul_kernel(x_ref, w_ref, o_ref, *, Cin):
    """Complex contraction over in_channels on the retained Fourier modes.

    Layouts (leading axis rs = reim*2 + stack; reim: 0=real, 1=imag):
      x_ref: (4, Cin, B*Cout, Mp) f32 — x[b, i] replicated over Cout sublanes
      w_ref: (4, Cin, B*Cout, Mp) f32 — w[i, o] tiled over B
      o_ref: (4,      B*Cout, Mp) f32
    out[s, b*Cout+o, m] = sum_i x[s, b, i, m] * w[s, i, o, m]   (complex mul)

    Every operand / accumulator / store is a full (8, 128)-aligned tile
    (B*Cout = 8 sublanes, Mp a multiple of 128 lanes): no masked vst, no XLU
    broadcast/relayout work, weights read once per (stack, in_channel).
    """
    # TODO(synk): at realistic FNO sizes (Cin/Cout >= 64, many modes) route the
    # Cin contraction through the MXU with a per-mode-block lax.dot_general
    # (preferred_element_type=f32; 128 tiles on v5e, 256 on v6e/v7x), switch
    # the unrolled loops to lax.fori_loop(..., unroll=True) with VMEM-scratch
    # accumulators, and add a "parallel" grid axis + vmem_limit_bytes so the
    # second v7x TensorCore is used and its 64 MiB VMEM is not exceeded.
    for s in range(2):                 # weight stack (low / high frequency rows)
        acc_r = None
        acc_i = None
        for i in range(Cin):           # tiny fixed trip count -> trace-time unroll
            xr = x_ref[s, i]           # (B*Cout, Mp)
            xi = x_ref[2 + s, i]
            wr = w_ref[s, i]           # loaded exactly once per (s, i)
            wi = w_ref[2 + s, i]
            # (a + ib)(c + id) = (ac - bd) + i(ad + bc)
            pr = xr * wr - xi * wi
            pi = xr * wi + xi * wr
            acc_r = pr if acc_r is None else acc_r + pr
            acc_i = pi if acc_i is None else acc_i + pi
        o_ref[s] = acc_r               # single full-tile unmasked store per slab
        o_ref[2 + s] = acc_i


@functools.partial(jax.jit, static_argnames=("modes1", "modes2"))
def spectral_conv2d(x, w1, w2, modes1, modes2):
    """Forward pass of SpectralConv2d.  x: (B, C_in, H, W) float32 (NCHW).
    w1, w2: (C_in, C_out, modes1, modes2) complex64."""
    B, Cin, H, W = x.shape
    Cout = w1.shape[1]
    Wf = W // 2 + 1
    assert modes1 <= H and modes2 <= Wf
    M = modes1 * modes2
    Mp = _round_up(M, 128)             # lane-dense padded mode axis
    BCo = B * Cout                     # sublane axis (= 8 at the test size)

    # TODO(synk): FFTs have no Pallas TPU primitive — rfft2/irfft2 stay in XLA.
    x_ft = jnp.fft.rfft2(x, axes=(-2, -1))                     # (B,Cin,H,Wf) c64
    lo = x_ft[:, :, :modes1, :modes2]                          # low-freq rows
    hi = x_ft[:, :, H - modes1:, :modes2]                      # high-freq rows
    xs = jnp.stack([lo, hi], axis=0).reshape(2, B, Cin, M)     # (stack,B,Cin,M)
    x_ri = jnp.stack([xs.real, xs.imag], 0).astype(jnp.float32)   # (reim,stack,B,Cin,M)

    # Layout plumbing (fused under jit): replicate x over Cout and fold
    # (B, Cout) into the sublane axis -> full-height (8, 128) kernel operands.
    x_rep = jnp.transpose(x_ri, (0, 1, 3, 2, 4))[:, :, :, :, None, :]   # (reim,stack,Cin,B,1,M)
    x_rep = jnp.broadcast_to(x_rep, (2, 2, Cin, B, Cout, M)).reshape(2, 2, Cin, BCo, M)

    ws = jnp.stack([w1, w2], axis=0).reshape(2, Cin, Cout, M)           # (stack,Cin,Cout,M)
    w_ri = jnp.stack([ws.real, ws.imag], 0).astype(jnp.float32)         # (reim,stack,Cin,Cout,M)
    w_rep = jnp.broadcast_to(w_ri[:, :, :, None, :, :],
                             (2, 2, Cin, B, Cout, M)).reshape(2, 2, Cin, BCo, M)

    # Zero-pad the mode (lane) axis to a multiple of 128; fold (reim, stack).
    pad = ((0, 0),) * 4 + ((0, Mp - M),)
    x_rep = jnp.pad(x_rep, pad).reshape(4, Cin, BCo, Mp)
    w_rep = jnp.pad(w_rep, pad).reshape(4, Cin, BCo, Mp)

    # Single gridless pallas_call: whole operands are ~150 KiB of VMEM, one
    # pipeline step, one DMA in/out per operand.
    out_rep = pl.pallas_call(
        functools.partial(spectral_mul_kernel, Cin=Cin),
        out_shape=jax.ShapeDtypeStruct((4, BCo, Mp), jnp.float32),
    )(x_rep, w_rep)

    # Strip lane padding, reassemble complex modes, scatter, inverse FFT.
    out_ri = out_rep[..., :M].reshape(2, 2, B, Cout, modes1, modes2)
    out_c = (out_ri[0] + 1j * out_ri[1]).astype(jnp.complex64)   # (stack,B,Cout,m1,m2)

    out_ft = jnp.zeros((B, Cout, H, Wf), jnp.complex64)
    out_ft = out_ft.at[:, :, :modes1, :modes2].set(out_c[0])
    # If 2*modes1 > H the two row blocks overlap and the second write wins —
    # this matches the PyTorch module's behavior exactly.
    out_ft = out_ft.at[:, :, H - modes1:, :modes2].set(out_c[1])

    return jnp.fft.irfft2(out_ft, s=(H, W), axes=(-2, -1))


def spectral_conv2d_ref(x, w1, w2, modes1, modes2):
    """Pure-JAX reference replicating the PyTorch forward exactly."""
    B, Cin, H, W = x.shape
    Cout = w1.shape[1]
    Wf = W // 2 + 1
    x_ft = jnp.fft.rfft2(x, axes=(-2, -1))
    out_ft = jnp.zeros((B, Cout, H, Wf), jnp.complex64)
    out_ft = out_ft.at[:, :, :modes1, :modes2].set(
        jnp.einsum('bixy,ioxy->boxy', x_ft[:, :, :modes1, :modes2], w1))
    out_ft = out_ft.at[:, :, H - modes1:, :modes2].set(
        jnp.einsum('bixy,ioxy->boxy', x_ft[:, :, H - modes1:, :modes2], w2))
    return jnp.fft.irfft2(out_ft, s=(H, W), axes=(-2, -1))


if __name__ == "__main__":
    # Module hyperparameters (small, consistent with the PyTorch __init__).
    B, Cin, Cout = 2, 4, 4
    H, W = 16, 16
    modes1, modes2 = 6, 6          # modes2 <= W//2 + 1 = 9

    key = jax.random.PRNGKey(0)
    kx, kw1r, kw1i, kw2r, kw2i = jax.random.split(key, 5)

    x = jax.random.normal(kx, (B, Cin, H, W), dtype=jnp.float32)

    # Deterministic parameter init mirroring torch: scale * rand(..., cfloat)
    scale = 1.0 / (Cin * Cout)
    w1 = (scale * jax.random.uniform(kw1r, (Cin, Cout, modes1, modes2))
          + 1j * scale * jax.random.uniform(kw1i, (Cin, Cout, modes1, modes2))
          ).astype(jnp.complex64)
    w2 = (scale * jax.random.uniform(kw2r, (Cin, Cout, modes1, modes2))
          + 1j * scale * jax.random.uniform(kw2i, (Cin, Cout, modes1, modes2))
          ).astype(jnp.complex64)

    y = jax.block_until_ready(spectral_conv2d(x, w1, w2, modes1, modes2))
    y_ref = jax.block_until_ready(spectral_conv2d_ref(x, w1, w2, modes1, modes2))

    assert y.shape == (B, Cout, H, W)
    assert jnp.allclose(y, y_ref, atol=1e-5, rtol=1e-5), "mismatch vs reference"

    print("KERNEL_OK")
</pallas_src>

<mosaic_0001>
module attributes {stable_mosaic.version = 11 : i64} {
  func.func @spectral_mul_kernel(%arg0: memref<4x4x8x128xf32, #tpu.memory_space<vmem>>, %arg1: memref<4x4x8x128xf32, #tpu.memory_space<vmem>>, %arg2: memref<4x8x128xf32, #tpu.memory_space<vmem>>) attributes {dimension_semantics = [], scalar_prefetch = 0 : i64, scratch_operands = 0 : i64, tpu.core_type = #tpu.core_type<tc>} {
    %c0 = arith.constant 0 : index
    %c0_0 = arith.constant 0 : index
    %c0_1 = arith.constant 0 : index
    %c0_2 = arith.constant 0 : index
    %0 = vector.load %arg0[%c0, %c0_0, %c0_1, %c0_2] : memref<4x4x8x128xf32, #tpu.memory_space<vmem>>, vector<1x1x8x128xf32>
    %1 = vector.shape_cast %0 : vector<1x1x8x128xf32> to vector<8x128xf32>
    %c2 = arith.constant 2 : index
    %c0_3 = arith.constant 0 : index
    %c0_4 = arith.constant 0 : index
    %c0_5 = arith.constant 0 : index
    %2 = vector.load %arg0[%c2, %c0_3, %c0_4, %c0_5] : memref<4x4x8x128xf32, #tpu.memory_space<vmem>>, vector<1x1x8x128xf32>
    %3 = vector.shape_cast %2 : vector<1x1x8x128xf32> to vector<8x128xf32>
    %c0_6 = arith.constant 0 : index
    %c0_7 = arith.constant 0 : index
    %c0_8 = arith.constant 0 : index
    %c0_9 = arith.constant 0 : index
    %4 = vector.load %arg1[%c0_6, %c0_7, %c0_8, %c0_9] : memref<4x4x8x128xf32, #tpu.memory_space<vmem>>, vector<1x1x8x128xf32>
    %5 = vector.shape_cast %4 : vector<1x1x8x128xf32> to vector<8x128xf32>
    %c2_10 = arith.constant 2 : index
    %c0_11 = arith.constant 0 : index
    %c0_12 = arith.constant 0 : index
    %c0_13 = arith.constant 0 : index
    %6 = vector.load %arg1[%c2_10, %c0_11, %c0_12, %c0_13] : memref<4x4x8x128xf32, #tpu.memory_space<vmem>>, vector<1x1x8x128xf32>
    %7 = vector.shape_cast %6 : vector<1x1x8x128xf32> to vector<8x128xf32>
    %8 = arith.mulf %1, %5 : vector<8x128xf32>
    %9 = arith.mulf %3, %7 : vector<8x128xf32>
    %10 = arith.subf %8, %9 : vector<8x128xf32>
    %11 = arith.mulf %1, %7 : vector<8x128xf32>
    %12 = arith.mulf %3, %5 : vector<8x128xf32>
    %13 = arith.addf %11, %12 : vector<8x128xf32>
    %c0_14 = arith.constant 0 : index
    %c1 = arith.constant 1 : index
    %c0_15 = arith.constant 0 : index
    %c0_16 = arith.constant 0 : index
    %14 = vector.load %arg0[%c0_14, %c1, %c0_15, %c0_16] : memref<4x4x8x128xf32, #tpu.memory_space<vmem>>, vector<1x1x8x128xf32>
    %15 = vector.shape_cast %14 : vector<1x1x8x128xf32> to vector<8x128xf32>
    %c2_17 = arith.constant 2 : index
    %c1_18 = arith.constant 1 : index
    %c0_19 = arith.constant 0 : index
    %c0_20 = arith.constant 0 : index
    %16 = vector.load %arg0[%c2_17, %c1_18, %c0_19, %c0_20] : memref<4x4x8x128xf32, #tpu.memory_space<vmem>>, vector<1x1x8x128xf32>
    %17 = vector.shape_cast %16 : vector<1x1x8x128xf32> to vector<8x128xf32>
    %c0_21 = arith.constant 0 : index
    %c1_22 = arith.constant 1 : index
    %c0_23 = arith.constant 0 : index
    %c0_24 = arith.constant 0 : index
    %18 = vector.load %arg1[%c0_21, %c1_22, %c0_23, %c0_24] : memref<4x4x8x128xf32, #tpu.memory_space<vmem>>, vector<1x1x8x128xf32>
    %19 = vector.shape_cast %18 : vector<1x1x8x128xf32> to vector<8x128xf32>
    %c2_25 = arith.constant 2 : index
    %c1_26 = arith.constant 1 : index
    %c0_27 = arith.constant 0 : index
    %c0_28 = arith.constant 0 : index
    %20 = vector.load %arg1[%c2_25, %c1_26, %c0_27, %c0_28] : memref<4x4x8x128xf32, #tpu.memory_space<vmem>>, vector<1x1x8x128xf32>
    %21 = vector.shape_cast %20 : vector<1x1x8x128xf32> to vector<8x128xf32>
    %22 = arith.mulf %15, %19 : vector<8x128xf32>
    %23 = arith.mulf %17, %21 : vector<8x128xf32>
    %24 = arith.subf %22, %23 : vector<8x128xf32>
    %25 = arith.mulf %15, %21 : vector<8x128xf32>
    %26 = arith.mulf %17, %19 : vector<8x128xf32>
    %27 = arith.addf %25, %26 : vector<8x128xf32>
    %28 = arith.addf %10, %24 : vector<8x128xf32>
    %29 = arith.addf %13, %27 : vector<8x128xf32>
    %c0_29 = arith.constant 0 : index
    %c2_30 = arith.constant 2 : index
    %c0_31 = arith.constant 0 : index
    %c0_32 = arith.constant 0 : index
    %30 = vector.load %arg0[%c0_29, %c2_30, %c0_31, %c0_32] : memref<4x4x8x128xf32, #tpu.memory_space<vmem>>, vector<1x1x8x128xf32>
    %31 = vector.shape_cast %30 : vector<1x1x8x128xf32> to vector<8x128xf32>
    %c2_33 = arith.constant 2 : index
    %c2_34 = arith.constant 2 : index
    %c0_35 = arith.constant 0 : index
    %c0_36 = arith.constant 0 : index
    %32 = vector.load %arg0[%c2_33, %c2_34, %c0_35, %c0_36] : memref<4x4x8x128xf32, #tpu.memory_space<vmem>>, vector<1x1x8x128xf32>
    %33 = vector.shape_cast %32 : vector<1x1x8x128xf32> to vector<8x128xf32>
    %c0_37 = arith.constant 0 : index
    %c2_38 = arith.constant 2 : index
    %c0_39 = arith.constant 0 : index
    %c0_40 = arith.constant 0 : index
    %34 = vector.load %arg1[%c0_37, %c2_38, %c0_39, %c0_40] : memref<4x4x8x128xf32, #tpu.memory_space<vmem>>, vector<1x1x8x128xf32>
    %35 = vector.shape_cast %34 : vector<1x1x8x128xf32> to vector<8x128xf32>
    %c2_41 = arith.constant 2 : index
    %c2_42 = arith.constant 2 : index
    %c0_43 = arith.constant 0 : index
    %c0_44 = arith.constant 0 : index
    %36 = vector.load %arg1[%c2_41, %c2_42, %c0_43, %c0_44] : memref<4x4x8x128xf32, #tpu.memory_space<vmem>>, vector<1x1x8x128xf32>
    %37 = vector.shape_cast %36 : vector<1x1x8x128xf32> to vector<8x128xf32>
    %38 = arith.mulf %31, %35 : vector<8x128xf32>
    %39 = arith.mulf %33, %37 : vector<8x128xf32>
    %40 = arith.subf %38, %39 : vector<8x128xf32>
    %41 = arith.mulf %31, %37 : vector<8x128xf32>
    %42 = arith.mulf %33, %35 : vector<8x128xf32>
    %43 = arith.addf %41, %42 : vector<8x128xf32>
    %44 = arith.addf %28, %40 : vector<8x128xf32>
    %45 = arith.addf %29, %43 : vector<8x128xf32>
    %c0_45 = arith.constant 0 : index
    %c3 = arith.constant 3 : index
    %c0_46 = arith.constant 0 : index
    %c0_47 = arith.constant 0 : index
    %46 = vector.load %arg0[%c0_45, %c3, %c0_46, %c0_47] : memref<4x4x8x128xf32, #tpu.memory_space<vmem>>, vector<1x1x8x128xf32>
    %47 = vector.shape_cast %46 : vector<1x1x8x128xf32> to vector<8x128xf32>
    %c2_48 = arith.constant 2 : index
    %c3_49 = arith.constant 3 : index
    %c0_50 = arith.constant 0 : index
    %c0_51 = arith.constant 0 : index
    %48 = vector.load %arg0[%c2_48, %c3_49, %c0_50, %c0_51] : memref<4x4x8x128xf32, #tpu.memory_space<vmem>>, vector<1x1x8x128xf32>
    %49 = vector.shape_cast %48 : vector<1x1x8x128xf32> to vector<8x128xf32>
    %c0_52 = arith.constant 0 : index
    %c3_53 = arith.constant 3 : index
    %c0_54 = arith.constant 0 : index
    %c0_55 = arith.constant 0 : index
    %50 = vector.load %arg1[%c0_52, %c3_53, %c0_54, %c0_55] : memref<4x4x8x128xf32, #tpu.memory_space<vmem>>, vector<1x1x8x128xf32>
    %51 = vector.shape_cast %50 : vector<1x1x8x128xf32> to vector<8x128xf32>
    %c2_56 = arith.constant 2 : index
    %c3_57 = arith.constant 3 : index
    %c0_58 = arith.constant 0 : index
    %c0_59 = arith.constant 0 : index
    %52 = vector.load %arg1[%c2_56, %c3_57, %c0_58, %c0_59] : memref<4x4x8x128xf32, #tpu.memory_space<vmem>>, vector<1x1x8x128xf32>
    %53 = vector.shape_cast %52 : vector<1x1x8x128xf32> to vector<8x128xf32>
    %54 = arith.mulf %47, %51 : vector<8x128xf32>
    %55 = arith.mulf %49, %53 : vector<8x128xf32>
    %56 = arith.subf %54, %55 : vector<8x128xf32>
    %57 = arith.mulf %47, %53 : vector<8x128xf32>
    %58 = arith.mulf %49, %51 : vector<8x128xf32>
    %59 = arith.addf %57, %58 : vector<8x128xf32>
    %60 = arith.addf %44, %56 : vector<8x128xf32>
    %61 = arith.addf %45, %59 : vector<8x128xf32>
    %c0_60 = arith.constant 0 : index
    %c0_61 = arith.constant 0 : index
    %c0_62 = arith.constant 0 : index
    %62 = vector.load %arg2[%c0_60, %c0_61, %c0_62] : memref<4x8x128xf32, #tpu.memory_space<vmem>>, vector<1x8x128xf32>
    %63 = vector.shape_cast %62 : vector<1x8x128xf32> to vector<8x128xf32>
    %64 = vector.shape_cast %60 : vector<8x128xf32> to vector<1x8x128xf32>
    tpu.vector_store %arg2[%c0_60, %c0_61, %c0_62], %64 {strides = array<i32>} : memref<4x8x128xf32, #tpu.memory_space<vmem>>, vector<1x8x128xf32>,
    %c2_63 = arith.constant 2 : index
    %c0_64 = arith.constant 0 : index
    %c0_65 = arith.constant 0 : index
    %65 = vector.load %arg2[%c2_63, %c0_64, %c0_65] : memref<4x8x128xf32, #tpu.memory_space<vmem>>, vector<1x8x128xf32>
    %66 = vector.shape_cast %65 : vector<1x8x128xf32> to vector<8x128xf32>
    %67 = vector.shape_cast %61 : vector<8x128xf32> to vector<1x8x128xf32>
    tpu.vector_store %arg2[%c2_63, %c0_64, %c0_65], %67 {strides = array<i32>} : memref<4x8x128xf32, #tpu.memory_space<vmem>>, vector<1x8x128xf32>,
    %c1_66 = arith.constant 1 : index
    %c0_67 = arith.constant 0 : index
    %c0_68 = arith.constant 0 : index
    %c0_69 = arith.constant 0 : index
    %68 = vector.load %arg0[%c1_66, %c0_67, %c0_68, %c0_69] : memref<4x4x8x128xf32, #tpu.memory_space<vmem>>, vector<1x1x8x128xf32>
    %69 = vector.shape_cast %68 : vector<1x1x8x128xf32> to vector<8x128xf32>
    %c3_70 = arith.constant 3 : index
    %c0_71 = arith.constant 0 : index
    %c0_72 = arith.constant 0 : index
    %c0_73 = arith.constant 0 : index
    %70 = vector.load %arg0[%c3_70, %c0_71, %c0_72, %c0_73] : memref<4x4x8x128xf32, #tpu.memory_space<vmem>>, vector<1x1x8x128xf32>
    %71 = vector.shape_cast %70 : vector<1x1x8x128xf32> to vector<8x128xf32>
    %c1_74 = arith.constant 1 : index
    %c0_75 = arith.constant 0 : index
    %c0_76 = arith.constant 0 : index
    %c0_77 = arith.constant 0 : index
    %72 = vector.load %arg1[%c1_74, %c0_75, %c0_76, %c0_77] : memref<4x4x8x128xf32, #tpu.memory_space<vmem>>, vector<1x1x8x128xf32>
    %73 = vector.shape_cast %72 : vector<1x1x8x128xf32> to vector<8x128xf32>
    %c3_78 = arith.constant 3 : index
    %c0_79 = arith.constant 0 : index
    %c0_80 = arith.constant 0 : index
    %c0_81 = arith.constant 0 : index
    %74 = vector.load %arg1[%c3_78, %c0_79, %c0_80, %c0_81] : memref<4x4x8x128xf32, #tpu.memory_space<vmem>>, vector<1x1x8x128xf32>
    %75 = vector.shape_cast %74 : vector<1x1x8x128xf32> to vector<8x128xf32>
    %76 = arith.mulf %69, %73 : vector<8x128xf32>
    %77 = arith.mulf %71, %75 : vector<8x128xf32>
    %78 = arith.subf %76, %77 : vector<8x128xf32>
    %79 = arith.mulf %69, %75 : vector<8x128xf32>
    %80 = arith.mulf %71, %73 : vector<8x128xf32>
    %81 = arith.addf %79, %80 : vector<8x128xf32>
    %c1_82 = arith.constant 1 : index
    %c1_83 = arith.constant 1 : index
    %c0_84 = arith.constant 0 : index
    %c0_85 = arith.constant 0 : index
    %82 = vector.load %arg0[%c1_82, %c1_83, %c0_84, %c0_85] : memref<4x4x8x128xf32, #tpu.memory_space<vmem>>, vector<1x1x8x128xf32>
    %83 = vector.shape_cast %82 : vector<1x1x8x128xf32> to vector<8x128xf32>
    %c3_86 = arith.constant 3 : index
    %c1_87 = arith.constant 1 : index
    %c0_88 = arith.constant 0 : index
    %c0_89 = arith.constant 0 : index
    %84 = vector.load %arg0[%c3_86, %c1_87, %c0_88, %c0_89] : memref<4x4x8x128xf32, #tpu.memory_space<vmem>>, vector<1x1x8x128xf32>
    %85 = vector.shape_cast %84 : vector<1x1x8x128xf32> to vector<8x128xf32>
    %c1_90 = arith.constant 1 : index
    %c1_91 = arith.constant 1 : index
    %c0_92 = arith.constant 0 : index
    %c0_93 = arith.constant 0 : index
    %86 = vector.load %arg1[%c1_90, %c1_91, %c0_92, %c0_93] : memref<4x4x8x128xf32, #tpu.memory_space<vmem>>, vector<1x1x8x128xf32>
    %87 = vector.shape_cast %86 : vector<1x1x8x128xf32> to vector<8x128xf32>
    %c3_94 = arith.constant 3 : index
    %c1_95 = arith.constant 1 : index
    %c0_96 = arith.constant 0 : index
    %c0_97 = arith.constant 0 : index
    %88 = vector.load %arg1[%c3_94, %c1_95, %c0_96, %c0_97] : memref<4x4x8x128xf32, #tpu.memory_space<vmem>>, vector<1x1x8x128xf32>
    %89 = vector.shape_cast %88 : vector<1x1x8x128xf32> to vector<8x128xf32>
    %90 = arith.mulf %83, %87 : vector<8x128xf32>
    %91 = arith.mulf %85, %89 : vector<8x128xf32>
    %92 = arith.subf %90, %91 : vector<8x128xf32>
    %93 = arith.mulf %83, %89 : vector<8x128xf32>
    %94 = arith.mulf %85, %87 : vector<8x128xf32>
    %95 = arith.addf %93, %94 : vector<8x128xf32>
    %96 = arith.addf %78, %92 : vector<8x128xf32>
    %97 = arith.addf %81, %95 : vector<8x128xf32>
    %c1_98 = arith.constant 1 : index
    %c2_99 = arith.constant 2 : index
    %c0_100 = arith.constant 0 : index
    %c0_101 = arith.constant 0 : index
    %98 = vector.load %arg0[%c1_98, %c2_99, %c0_100, %c0_101] : memref<4x4x8x128xf32, #tpu.memory_space<vmem>>, vector<1x1x8x128xf32>
    %99 = vector.shape_cast %98 : vector<1x1x8x128xf32> to vector<8x128xf32>
    %c3_102 = arith.constant 3 : index
    %c2_103 = arith.constant 2 : index
    %c0_104 = arith.constant 0 : index
    %c0_105 = arith.constant 0 : index
    %100 = vector.load %arg0[%c3_102, %c2_103, %c0_104, %c0_105] : memref<4x4x8x128xf32, #tpu.memory_space<vmem>>, vector<1x1x8x128xf32>
    %101 = vector.shape_cast %100 : vector<1x1x8x128xf32> to vector<8x128xf32>
    %c1_106 = arith.constant 1 : index
    %c2_107 = arith.constant 2 : index
    %c0_108 = arith.constant 0 : index
    %c0_109 = arith.constant 0 : index
    %102 = vector.load %arg1[%c1_106, %c2_107, %c0_108, %c0_109] : memref<4x4x8x128xf32, #tpu.memory_space<vmem>>, vector<1x1x8x128xf32>
    %103 = vector.shape_cast %102 : vector<1x1x8x128xf32> to vector<8x128xf32>
    %c3_110 = arith.constant 3 : index
    %c2_111 = arith.constant 2 : index
    %c0_112 = arith.constant 0 : index
    %c0_113 = arith.constant 0 : index
    %104 = vector.load %arg1[%c3_110, %c2_111, %c0_112, %c0_113] : memref<4x4x8x128xf32, #tpu.memory_space<vmem>>, vector<1x1x8x128xf32>
    %105 = vector.shape_cast %104 : vector<1x1x8x128xf32> to vector<8x128xf32>
    %106 = arith.mulf %99, %103 : vector<8x128xf32>
    %107 = arith.mulf %101, %105 : vector<8x128xf32>
    %108 = arith.subf %106, %107 : vector<8x128xf32>
    %109 = arith.mulf %99, %105 : vector<8x128xf32>
    %110 = arith.mulf %101, %103 : vector<8x128xf32>
    %111 = arith.addf %109, %110 : vector<8x128xf32>
    %112 = arith.addf %96, %108 : vector<8x128xf32>
    %113 = arith.addf %97, %111 : vector<8x128xf32>
    %c1_114 = arith.constant 1 : index
    %c3_115 = arith.constant 3 : index
    %c0_116 = arith.constant 0 : index
    %c0_117 = arith.constant 0 : index
    %114 = vector.load %arg0[%c1_114, %c3_115, %c0_116, %c0_117] : memref<4x4x8x128xf32, #tpu.memory_space<vmem>>, vector<1x1x8x128xf32>
    %115 = vector.shape_cast %114 : vector<1x1x8x128xf32> to vector<8x128xf32>
    %c3_118 = arith.constant 3 : index
    %c3_119 = arith.constant 3 : index
    %c0_120 = arith.constant 0 : index
    %c0_121 = arith.constant 0 : index
    %116 = vector.load %arg0[%c3_118, %c3_119, %c0_120, %c0_121] : memref<4x4x8x128xf32, #tpu.memory_space<vmem>>, vector<1x1x8x128xf32>
    %117 = vector.shape_cast %116 : vector<1x1x8x128xf32> to vector<8x128xf32>
    %c1_122 = arith.constant 1 : index
    %c3_123 = arith.constant 3 : index
    %c0_124 = arith.constant 0 : index
    %c0_125 = arith.constant 0 : index
    %118 = vector.load %arg1[%c1_122, %c3_123, %c0_124, %c0_125] : memref<4x4x8x128xf32, #tpu.memory_space<vmem>>, vector<1x1x8x128xf32>
    %119 = vector.shape_cast %118 : vector<1x1x8x128xf32> to vector<8x128xf32>
    %c3_126 = arith.constant 3 : index
    %c3_127 = arith.constant 3 : index
    %c0_128 = arith.constant 0 : index
    %c0_129 = arith.constant 0 : index
    %120 = vector.load %arg1[%c3_126, %c3_127, %c0_128, %c0_129] : memref<4x4x8x128xf32, #tpu.memory_space<vmem>>, vector<1x1x8x128xf32>
    %121 = vector.shape_cast %120 : vector<1x1x8x128xf32> to vector<8x128xf32>
    %122 = arith.mulf %115, %119 : vector<8x128xf32>
    %123 = arith.mulf %117, %121 : vector<8x128xf32>
    %124 = arith.subf %122, %123 : vector<8x128xf32>
    %125 = arith.mulf %115, %121 : vector<8x128xf32>
    %126 = arith.mulf %117, %119 : vector<8x128xf32>
    %127 = arith.addf %125, %126 : vector<8x128xf32>
    %128 = arith.addf %112, %124 : vector<8x128xf32>
    %129 = arith.addf %113, %127 : vector<8x128xf32>
    %c1_130 = arith.constant 1 : index
    %c0_131 = arith.constant 0 : index
    %c0_132 = arith.constant 0 : index
    %130 = vector.load %arg2[%c1_130, %c0_131, %c0_132] : memref<4x8x128xf32, #tpu.memory_space<vmem>>, vector<1x8x128xf32>
    %131 = vector.shape_cast %130 : vector<1x8x128xf32> to vector<8x128xf32>
    %132 = vector.shape_cast %128 : vector<8x128xf32> to vector<1x8x128xf32>
    tpu.vector_store %arg2[%c1_130, %c0_131, %c0_132], %132 {strides = array<i32>} : memref<4x8x128xf32, #tpu.memory_space<vmem>>, vector<1x8x128xf32>,
    %c3_133 = arith.constant 3 : index
    %c0_134 = arith.constant 0 : index
    %c0_135 = arith.constant 0 : index
    %133 = vector.load %arg2[%c3_133, %c0_134, %c0_135] : memref<4x8x128xf32, #tpu.memory_space<vmem>>, vector<1x8x128xf32>
    %134 = vector.shape_cast %133 : vector<1x8x128xf32> to vector<8x128xf32>
    %135 = vector.shape_cast %129 : vector<8x128xf32> to vector<1x8x128xf32>
    tpu.vector_store %arg2[%c3_133, %c0_134, %c0_135], %135 {strides = array<i32>} : memref<4x8x128xf32, #tpu.memory_space<vmem>>, vector<1x8x128xf32>,
    return
  }
}

</mosaic_0001>

<bundles_post_ra>
// kernel: custom-call
= control target key start
LH: loop header
LB: loop body
LE: loop exit
PB: predicated region body
PF: predicated region fallthrough
CT: control target
= control target key end

     0   :  { %2 = vsyncpa [#allocation0], 0  ;;  %s61_s0 = inlined_call_operand.hbm [shape: c64[4,4,6,6], index: 0, kind: input, shape index: {}]   ;;  %s62_s1 = inlined_call_operand.vmem [shape: f32[4,4,6,6], index: 1, kind: output, shape index: {}]  }
   0x1   :  { %s3_s8 = sshll.u32 %s62_s1, 4  ;;  %s9_s11 = scalar_lea.hbm %s61_s0, 1536  ;;  %s4_s8 = int_to_ptr.vmem [resolvable:$true] %s3_s8 }
   0x2   :  { %p10_p0 = scmp.ne.s32.totalorder %s61_s0, %s9_s11  ;;  %s11_s16 = scalar_lea.hbm %s61_s0, 3072 }
   0x3   :  { %p12_p1 = scmp.lt.u32.totalorder %s11_s16, %s9_s11  ;;  %p13_p2 = scmp.lt.u32.totalorder %s9_s11, %s61_s0 }
   0x5   :  { %p14_p3 = por %p13_p2, %p12_p1 }
   0x7   :  { %p15_p4 = pnand %p14_p3, %p10_p0 }
   0x9   :  { %18 = shalt.err (!%p15_p4)  }
   0xa   :  { %s19_s1 = scalar_lea.vmem %s4_s8, 1536  ;;  %p24_p6 = scmp.lt.s32.totalorder %s4_s8, %s4_s8 }
   0xb   :  { %p20_p5 = scmp.ne.s32.totalorder %s4_s8, %s19_s1  ;;  %p25_p7 = scmp.lt.s32.totalorder %s19_s1, %s19_s1 }
   0xd   :  { %p26_p8 = por %p25_p7, %p24_p6 }
   0xf   :  { %p27_p9 = pnand %p26_p8, %p20_p5 }
  0x11   :  { %30 = shalt.err (!%p27_p9)  }
  0x12   :  { %6 = dma.hbm_to_vmem [thread:$0]  %s61_s0, 1536, %s4_s8, [#allocation0] }
  0x13   :  { %31 = dma.done.wait [#allocation0], 1536  }
  0x14   :  { %32 = vsyncadd [#allocation0], 4294965760 }
  0x15   :  { %8 = vsyncpa [#allocation0], 1 }

// kernel: custom-call.1
= control target key start
LH: loop header
LB: loop body
LE: loop exit
PB: predicated region body
PF: predicated region fallthrough
CT: control target
= control target key end

     0   :  { %s59_s0 = inlined_call_operand.hbm [shape: c64[4,4,6,6], index: 0, kind: input, shape index: {}]   ;;  %s60_s1 = inlined_call_operand.vmem [shape: f32[4,4,6,6], index: 1, kind: output, shape index: {}]  }
   0x1   :  { %s2_s8 = scalar_lea.hbm %s59_s0, 1536 }
   0x2   :  { %3 = vsyncpa [#allocation0], 0  ;;  %s4_s11 = sshll.u32 %s60_s1, 4  ;;  %s34_s14 = scalar_lea.hbm %s59_s0, 3072  ;;  %s5_s11 = int_to_ptr.vmem [resolvable:$true] %s4_s11 }
   0x3   :  { %p11_p0 = scmp.ne.s32.totalorder %s2_s8, %s34_s14  ;;  %p13_p1 = scmp.lt.u32.totalorder %s2_s8, %s59_s0 }
   0x4   :  { %p14_p2 = scmp.lt.u32.totalorder %s34_s14, %s34_s14  ;;  %p16_p4 = scmp.lt.u32.totalorder %s34_s14, %s2_s8 }
   0x6   :  { %p15_p3 = por %p14_p2, %p13_p1 }
   0x8   :  { %p17_p5 = por %p16_p4, %p15_p3 }
   0xa   :  { %p18_p6 = pnand %p17_p5, %p11_p0 }
   0xc   :  { %21 = shalt.err (!%p18_p6)  }
   0xd   :  { %s22_s17 = scalar_lea.vmem %s5_s11, 1536  ;;  %p27_p8 = scmp.lt.s32.totalorder %s5_s11, %s5_s11 }
   0xe   :  { %p23_p7 = scmp.ne.s32.totalorder %s5_s11, %s22_s17  ;;  %p28_p9 = scmp.lt.s32.totalorder %s22_s17, %s22_s17 }
  0x10   :  { %p29_p10 = por %p28_p9, %p27_p8 }
  0x12   :  { %p30_p11 = pnand %p29_p10, %p23_p7 }
  0x14   :  { %33 = shalt.err (!%p30_p11)  }
  0x15   :  { %7 = dma.hbm_to_vmem [thread:$0]  %s2_s8, 1536, %s5_s11, [#allocation0] }
  0x16   :  { %35 = dma.done.wait [#allocation0], 1536  }
  0x17   :  { %36 = vsyncadd [#allocation0], 4294965760 }
  0x18   :  { %9 = vsyncpa [#allocation0], 1 }

// kernel: squeeze.4
= control target key start
LH: loop header
LB: loop body
LE: loop exit
PB: predicated region body
PF: predicated region fallthrough
CT: control target
= control target key end

     0   :  { %vm3_vm0 = vcmask 48128   ;;  %s132_s10 = smov 122   ;;  %s133_s19 = smov 110   ;;  %s248_s0 = inlined_call_operand.vmem [shape: f32[2,8,36], index: 0, kind: input, shape index: {}]   ;;  %s249_s1 = inlined_call_operand.vmem [shape: f32[2,2,4,6,6], index: 1, kind: output, shape index: {}]  }
   0x1   :  { %v30_v0 = vld [vmem:[%s248_s0] sm:$0xff]   ;;  %v98_v1 = vld [vmem:[%s248_s0 + $0x8] sm:$0xff]   ;;  %s131_s0 = smov 116   ;;  %s134_s20 = smov 104  }
   0x2   :  { %31 = vrot.lane.b32.xlu1 %v30_v0, %s131_s0  ;;  %14 = vrot.lane.b32.xlu0 %v30_v0, %s132_s10  ;;  %4 = vst.msk [vmem:[%s249_s1] ss:$8 sm:$0xf] %vm3_vm0, %v30_v0   ;;  %5 = vst.msk [vmem:[%s249_s1] ss:$8 sm:$0xf0] %vm3_vm0, %v30_v0  }
   0x3   :  { %99 = vst.msk [vmem:[%s249_s1 + $0x40] ss:$8 sm:$0xf] %vm3_vm0, %v98_v1   ;;  %100 = vst.msk [vmem:[%s249_s1 + $0x40] ss:$8 sm:$0xf0] %vm3_vm0, %v98_v1  }
   0x4   :  { %s135_s21 = smov 98  }
   0x6   :  { %40 = vrot.lane.b32.xlu1 %v98_v1, %s131_s0  ;;  %23 = vrot.lane.b32.xlu0 %v98_v1, %s132_s10 }
   0xa   :  { %57 = vrot.lane.b32.xlu1 %v98_v1, %s133_s19  ;;  %48 = vrot.lane.b32.xlu0 %v30_v0, %s133_s19 }
   0xe   :  { %74 = vrot.lane.b32.xlu1 %v98_v1, %s134_s20  ;;  %65 = vrot.lane.b32.xlu0 %v30_v0, %s134_s20 }
  0x12   :  { %91 = vrot.lane.b32.xlu1 %v98_v1, %s135_s21  ;;  %82 = vrot.lane.b32.xlu0 %v30_v0, %s135_s21 }
  0x74   :  { %v32_v2 = vpop.permute.xlu1 %31   ;;  %v15_v3 = vpop.permute.xlu0 %14  }
  0x75   :  { %106 = vst.msk [vmem:[%s249_s1 + $0x2] ss:$8 sm:$0xf] %vm3_vm0, %v32_v2   ;;  %107 = vst.msk [vmem:[%s249_s1 + $0x2] ss:$8 sm:$0xf0] %vm3_vm0, %v32_v2  }
  0x76   :  { %101 = vst.msk [vmem:[%s249_s1 + $0x1] ss:$8 sm:$0xf] %vm3_vm0, %v15_v3   ;;  %102 = vst.msk [vmem:[%s249_s1 + $0x1] ss:$8 sm:$0xf0] %vm3_vm0, %v15_v3  }
  0x78   :  { %v41_v4 = vpop.permute.xlu1 %40   ;;  %v24_v5 = vpop.permute.xlu0 %23  }
  0x79   :  { %109 = vst.msk [vmem:[%s249_s1 + $0x42] ss:$8 sm:$0xf] %vm3_vm0, %v41_v4   ;;  %110 = vst.msk [vmem:[%s249_s1 + $0x42] ss:$8 sm:$0xf0] %vm3_vm0, %v41_v4  }
  0x7a   :  { %104 = vst.msk [vmem:[%s249_s1 + $0x41] ss:$8 sm:$0xf] %vm3_vm0, %v24_v5   ;;  %105 = vst.msk [vmem:[%s249_s1 + $0x41] ss:$8 sm:$0xf0] %vm3_vm0, %v24_v5  }
  0x7c   :  { %v58_v6 = vpop.permute.xlu1 %57   ;;  %v49_v7 = vpop.permute.xlu0 %48  }
  0x7d   :  { %114 = vst.msk [vmem:[%s249_s1 + $0x43] ss:$8 sm:$0xf] %vm3_vm0, %v58_v6   ;;  %115 = vst.msk [vmem:[%s249_s1 + $0x43] ss:$8 sm:$0xf0] %vm3_vm0, %v58_v6  }
  0x7e   :  { %111 = vst.msk [vmem:[%s249_s1 + $0x3] ss:$8 sm:$0xf] %vm3_vm0, %v49_v7   ;;  %112 = vst.msk [vmem:[%s249_s1 + $0x3] ss:$8 sm:$0xf0] %vm3_vm0, %v49_v7  }
  0x80   :  { %v75_v8 = vpop.permute.xlu1 %74   ;;  %v66_v9 = vpop.permute.xlu0 %65  }
  0x81   :  { %119 = vst.msk [vmem:[%s249_s1 + $0x44] ss:$8 sm:$0xf] %vm3_vm0, %v75_v8   ;;  %120 = vst.msk [vmem:[%s249_s1 + $0x44] ss:$8 sm:$0xf0] %vm3_vm0, %v75_v8  }
  0x82   :  { %116 = vst.msk [vmem:[%s249_s1 + $0x4] ss:$8 sm:$0xf] %vm3_vm0, %v66_v9   ;;  %117 = vst.msk [vmem:[%s249_s1 + $0x4] ss:$8 sm:$0xf0] %vm3_vm0, %v66_v9  }
  0x84   :  { %v92_v10 = vpop.permute.xlu1 %91   ;;  %v83_v11 = vpop.permute.xlu0 %82  }
  0x85   :  { %124 = vst.msk [vmem:[%s249_s1 + $0x45] ss:$8 sm:$0xf] %vm3_vm0, %v92_v10   ;;  %125 = vst.msk [vmem:[%s249_s1 + $0x45] ss:$8 sm:$0xf0] %vm3_vm0, %v92_v10  }
  0x86   :  { %121 = vst.msk [vmem:[%s249_s1 + $0x5] ss:$8 sm:$0xf] %vm3_vm0, %v83_v11   ;;  %122 = vst.msk [vmem:[%s249_s1 + $0x5] ss:$8 sm:$0xf0] %vm3_vm0, %v83_v11  }

// kernel: spectral_conv2d.1
= control target key start
LH: loop header
LB: loop body
LE: loop exit
PB: predicated region body
PF: predicated region fallthrough
CT: control target
= control target key end

     0   :  { %s300_s0 = inlined_call_operand.vmem [shape: f32[4,4,8,128], index: 0, kind: input, shape index: {}]   ;;  %s301_s1 = inlined_call_operand.vmem [shape: f32[4,4,8,128], index: 1, kind: input, shape index: {}]   ;;  %s302_s2 = inlined_call_operand.vmem [shape: f32[4,8,128], index: 2, kind: output, shape index: {}]  }
   0x1   :  { %v11_v0 = vld [vmem:[%s300_s0] sm:$0xff]  ;;  %v146_v5 = vld [vmem:[%s300_s0 + $0x8] sm:$0xff]  ;;  %v150_v11 = vld [vmem:[%s300_s0 + $0x10] sm:$0xff] }
   0x2   :  { %v144_v1 = vld [vmem:[%s300_s0 + $0x40] sm:$0xff]  ;;  %v147_v6 = vld [vmem:[%s300_s0 + $0x48] sm:$0xff]  ;;  %v151_v15 = vld [vmem:[%s300_s0 + $0x50] sm:$0xff] }
   0x3   :  { %v14_v2 = vld [vmem:[%s301_s1] sm:$0xff]  ;;  %v148_v9 = vld [vmem:[%s301_s1 + $0x8] sm:$0xff]  ;;  %v152_v16 = vld [vmem:[%s301_s1 + $0x10] sm:$0xff] }
   0x4   :  { %v145_v3 = vld [vmem:[%s301_s1 + $0x40] sm:$0xff]  ;;  %v17_v4 = vmul.f32 %v14_v2, %v11_v0  ;;  %v21_v7 = vmul.f32 %v144_v1, %v14_v2  ;;  %v149_v10 = vld [vmem:[%s301_s1 + $0x48] sm:$0xff]  ;;  %v31_v13 = vmul.f32 %v148_v9, %v146_v5  ;;  %v153_v17 = vld [vmem:[%s301_s1 + $0x50] sm:$0xff]  ;;  %v35_v19 = vmul.f32 %v148_v9, %v147_v6 }
   0x5   :  { %v18_v8 = vmul.f32 %v145_v3, %v144_v1  ;;  %v20_v12 = vmul.f32 %v145_v3, %v11_v0  ;;  %v32_v14 = vmul.f32 %v149_v10, %v147_v6  ;;  %v34_v18 = vmul.f32 %v149_v10, %v146_v5  ;;  %v154_v23 = vld [vmem:[%s300_s0 + $0x18] sm:$0xff]  ;;  %v159_v32 = vld [vmem:[%s300_s0 + $0x20] sm:$0xff]  ;;  %v163_v40 = vld [vmem:[%s300_s0 + $0x28] sm:$0xff] }
   0x6   :  { %v47_v21 = vmul.f32 %v152_v16, %v150_v11  ;;  %v48_v22 = vmul.f32 %v153_v17, %v151_v15  ;;  %v155_v24 = vld [vmem:[%s300_s0 + $0x58] sm:$0xff]  ;;  %v50_v31 = vmul.f32 %v153_v17, %v150_v11  ;;  %v160_v33 = vld [vmem:[%s300_s0 + $0x60] sm:$0xff]  ;;  %v51_v36 = vmul.f32 %v152_v16, %v151_v15  ;;  %v164_v45 = vld [vmem:[%s300_s0 + $0x68] sm:$0xff] }
   0x7   :  { %v19_v20 = vsub.f32 %v17_v4, %v18_v8  ;;  %v156_v25 = vld [vmem:[%s301_s1 + $0x18] sm:$0xff]  ;;  %v22_v26 = vadd.f32 %v21_v7, %v20_v12  ;;  %v33_v27 = vsub.f32 %v31_v13, %v32_v14  ;;  %v36_v30 = vadd.f32 %v35_v19, %v34_v18  ;;  %v161_v38 = vld [vmem:[%s301_s1 + $0x20] sm:$0xff]  ;;  %v165_v46 = vld [vmem:[%s301_s1 + $0x28] sm:$0xff] }
   0x8   :  { %v157_v28 = vld [vmem:[%s301_s1 + $0x58] sm:$0xff]  ;;  %v63_v29 = vmul.f32 %v156_v25, %v154_v23  ;;  %v49_v34 = vsub.f32 %v47_v21, %v48_v22  ;;  %v162_v39 = vld [vmem:[%s301_s1 + $0x60] sm:$0xff]  ;;  %v67_v43 = vmul.f32 %v156_v25, %v155_v24  ;;  %v82_v44 = vmul.f32 %v161_v38, %v159_v32  ;;  %v166_v47 = vld [vmem:[%s301_s1 + $0x68] sm:$0xff] }
   0x9   :  { %v64_v35 = vmul.f32 %v157_v28, %v155_v24  ;;  %v66_v37 = vmul.f32 %v157_v28, %v154_v23  ;;  %v37_v41 = vadd.f32 %v33_v27, %v19_v20  ;;  %v38_v42 = vadd.f32 %v36_v30, %v22_v26  ;;  %v167_v52 = vld [vmem:[%s300_s0 + $0x30] sm:$0xff]  ;;  %v171_v60 = vld [vmem:[%s300_s0 + $0x38] sm:$0xff] }
   0xa   :  { %v52_v49 = vadd.f32 %v51_v36, %v50_v31  ;;  %v83_v50 = vmul.f32 %v162_v39, %v160_v33  ;;  %v96_v51 = vmul.f32 %v165_v46, %v163_v40  ;;  %v168_v53 = vld [vmem:[%s300_s0 + $0x70] sm:$0xff]  ;;  %v97_v57 = vmul.f32 %v166_v47, %v164_v45  ;;  %v172_v61 = vld [vmem:[%s300_s0 + $0x78] sm:$0xff] }
   0xb   :  { %v65_v48 = vsub.f32 %v63_v29, %v64_v35  ;;  %v169_v54 = vld [vmem:[%s301_s1 + $0x30] sm:$0xff]  ;;  %v53_v55 = vadd.f32 %v49_v34, %v37_v41  ;;  %v68_v56 = vadd.f32 %v67_v43, %v66_v37  ;;  %v173_v1 = vld [vmem:[%s301_s1 + $0x38] sm:$0xff]  ;;  %v85_v3 = vmul.f32 %v162_v39, %v159_v32 }
   0xc   :  { %v170_v58 = vld [vmem:[%s301_s1 + $0x70] sm:$0xff]  ;;  %v112_v59 = vmul.f32 %v169_v54, %v167_v52  ;;  %v54_v62 = vadd.f32 %v52_v49, %v38_v42  ;;  %v84_v63 = vsub.f32 %v82_v44, %v83_v50  ;;  %v174_v2 = vld [vmem:[%s301_s1 + $0x78] sm:$0xff]  ;;  %v98_v5 = vsub.f32 %v96_v51, %v97_v57 }
   0xd   :  { %v113_v0 = vmul.f32 %v170_v58, %v168_v53  ;;  %v69_v4 = vadd.f32 %v65_v48, %v53_v55  ;;  %v128_v6 = vmul.f32 %v173_v1, %v171_v60  ;;  %v129_v7 = vmul.f32 %v174_v2, %v172_v61 }
   0xe   :  { %v70_v8 = vadd.f32 %v68_v56, %v54_v62  ;;  %v86_v10 = vmul.f32 %v161_v38, %v160_v33  ;;  %v99_v11 = vmul.f32 %v166_v47, %v163_v40  ;;  %v102_v12 = vadd.f32 %v98_v5, %v84_v63 }
   0xf   :  { %v114_v9 = vsub.f32 %v112_v59, %v113_v0  ;;  %71 = vst [vmem:[%s302_s2] sm:$0xff] %v69_v4  ;;  %v130_v13 = vsub.f32 %v128_v6, %v129_v7  ;;  %v100_v14 = vmul.f32 %v165_v46, %v164_v45  ;;  %v115_v15 = vmul.f32 %v170_v58, %v167_v52 }
  0x10   :  { %158 = vst [vmem:[%s302_s2 + $0x10] sm:$0xff] %v70_v8  ;;  %v87_v16 = vadd.f32 %v86_v10, %v85_v3  ;;  %v116_v17 = vmul.f32 %v169_v54, %v168_v53  ;;  %v131_v18 = vmul.f32 %v174_v2, %v171_v60  ;;  %v132_v19 = vmul.f32 %v173_v1, %v172_v61 }
  0x11   :  { %v118_v20 = vadd.f32 %v114_v9, %v102_v12  ;;  %v101_v21 = vadd.f32 %v100_v14, %v99_v11 }
  0x12   :  { %v117_v22 = vadd.f32 %v116_v17, %v115_v15  ;;  %v133_v25 = vadd.f32 %v132_v19, %v131_v18 }
  0x13   :  { %v134_v23 = vadd.f32 %v130_v13, %v118_v20  ;;  %v103_v24 = vadd.f32 %v101_v21, %v87_v16 }
  0x15   :  { %175 = vst [vmem:[%s302_s2 + $0x8] sm:$0xff] %v134_v23  ;;  %v119_v26 = vadd.f32 %v117_v22, %v103_v24 }
  0x17   :  { %v135_v27 = vadd.f32 %v133_v25, %v119_v26 }
  0x19   :  { %176 = vst [vmem:[%s302_s2 + $0x18] sm:$0xff] %v135_v27 }

// kernel: reverse.0
= control target key start
LH: loop header
LB: loop body
LE: loop exit
PB: predicated region body
PF: predicated region fallthrough
CT: control target
= control target key end

     0   :  { %v71_v3 = vlaneseq  ;;  %v64_v9 = vld [vmem:[#allocation0 + $0x7] ss:$-1 sm:$0xff]  ;;  %v78_v12 = vld [vmem:[#allocation0 + $0x17] ss:$-1 sm:$0xff]  ;;  %s329_s0 = inlined_call_operand.vmem [shape: f32[2,4,16,7], index: 0, kind: input, shape index: {}]   ;;  %s330_s1 = inlined_call_operand.vmem [shape: f32[2,4,16,7], index: 1, kind: output, shape index: {}]  }
   0x1   :  { %v44_v0 = vld [vmem:[%s329_s0] sm:$0xff]  ;;  %v46_v1 = vld [vmem:[%s329_s0 + $0x8] sm:$0xff]  ;;  %v48_v2 = vld [vmem:[%s329_s0 + $0x10] sm:$0xff]  ;;  %v65_v10 = vrot.slane %v64_v9, 1  ;;  %v79_v14 = vrot.slane %v78_v12, 1 }
   0x2   :  { %45 = vst [vmem:[#allocation0 + $0x8] sm:$0xff] %v44_v0  ;;  %47 = vst [vmem:[#allocation0 + $0x18] sm:$0xff] %v46_v1  ;;  %v50_v4 = vld [vmem:[%s329_s0 + $0x18] sm:$0xff]  ;;  %v52_v5 = vld [vmem:[%s329_s0 + $0x20] sm:$0xff]  ;;  %v72_v11 = vshrl.u32 %v71_v3, 7 }
   0x3   :  { %49 = vst [vmem:[#allocation0 + $0x28] sm:$0xff] %v48_v2  ;;  %v54_v6 = vld [vmem:[%s329_s0 + $0x28] sm:$0xff]  ;;  %51 = vst [vmem:[#allocation0 + $0x38] sm:$0xff] %v50_v4  ;;  %v56_v7 = vld [vmem:[%s329_s0 + $0x30] sm:$0xff] }
   0x4   :  { %53 = vst [vmem:[#allocation0 + $0x48] sm:$0xff] %v52_v5  ;;  %55 = vst [vmem:[#allocation0 + $0x58] sm:$0xff] %v54_v6  ;;  %v58_v8 = vld [vmem:[%s329_s0 + $0x38] sm:$0xff]  ;;  %v92_v13 = vld [vmem:[#allocation0 + $0x27] ss:$-1 sm:$0xff]  ;;  %vm73_vm0 = vcmp.lt.s32.totalorder %v72_v11, 7 }
   0x5   :  { %57 = vst [vmem:[#allocation0 + $0x68] sm:$0xff] %v56_v7  ;;  %59 = vst [vmem:[#allocation0 + $0x78] sm:$0xff] %v58_v8  ;;  %v93_v15 = vrot.slane %v92_v13, 1  ;;  %v106_v16 = vld [vmem:[#allocation0 + $0x37] ss:$-1 sm:$0xff] }
   0x6   :  { %66 = vst [vmem:[#allocation1] sm:$0xff] %v65_v10  ;;  %v107_v17 = vrot.slane %v106_v16, 1  ;;  %v120_v18 = vld [vmem:[#allocation0 + $0x47] ss:$-1 sm:$0xff]  ;;  %v134_v19 = vld [vmem:[#allocation0 + $0x57] ss:$-1 sm:$0xff] }
   0x7   :  { %80 = vst [vmem:[#allocation1 + $0x8] sm:$0xff] %v79_v14  ;;  %94 = vst [vmem:[#allocation1 + $0x10] sm:$0xff] %v93_v15  ;;  %v121_v20 = vrot.slane %v120_v18, 1  ;;  %v135_v21 = vrot.slane %v134_v19, 1  ;;  %v148_v22 = vld [vmem:[#allocation0 + $0x67] ss:$-1 sm:$0xff] }
   0x8   :  { %v162_v23 = vld [vmem:[#allocation0 + $0x77] ss:$-1 sm:$0xff]  ;;  %108 = vst [vmem:[#allocation1 + $0x18] sm:$0xff] %v107_v17  ;;  %v149_v24 = vrot.slane %v148_v22, 1 }
   0x9   :  { %v163_v25 = vrot.slane %v162_v23, 1  ;;  %v69_v26 = vld [vmem:[#allocation0 + $0xf] ss:$-1 sm:$0xff]  ;;  %v83_v27 = vld [vmem:[#allocation0 + $0x1f] ss:$-1 sm:$0xff]  ;;  %122 = vst [vmem:[#allocation1 + $0x20] sm:$0xff] %v121_v20 }
   0xa   :  { %v97_v28 = vld [vmem:[#allocation0 + $0x2f] ss:$-1 sm:$0xff]  ;;  %136 = vst [vmem:[#allocation1 + $0x28] sm:$0xff] %v135_v21  ;;  %v70_v29 = vrot.slane %v69_v26, 1  ;;  %v84_v30 = vrot.slane %v83_v27, 1  ;;  %150 = vst [vmem:[#allocation1 + $0x30] sm:$0xff] %v149_v24 }
   0xb   :  { %v98_v31 = vrot.slane %v97_v28, 1  ;;  %v111_v32 = vld [vmem:[#allocation0 + $0x3f] ss:$-1 sm:$0xff]  ;;  %164 = vst [vmem:[#allocation1 + $0x38] sm:$0xff] %v163_v25  ;;  %v125_v34 = vld [vmem:[#allocation0 + $0x4f] ss:$-1 sm:$0xff] }
   0xc   :  { %v112_v33 = vrot.slane %v111_v32, 1  ;;  %v139_v35 = vld [vmem:[#allocation0 + $0x5f] ss:$-1 sm:$0xff]  ;;  %74 = vst.msk [vmem:[#allocation1] sm:$0xff] %vm73_vm0, %v70_v29  ;;  %88 = vst.msk [vmem:[#allocation1 + $0x8] sm:$0xff] %vm73_vm0, %v84_v30  ;;  %v126_v36 = vrot.slane %v125_v34, 1 }
   0xd   :  { %102 = vst.msk [vmem:[#allocation1 + $0x10] sm:$0xff] %vm73_vm0, %v98_v31  ;;  %v140_v37 = vrot.slane %v139_v35, 1  ;;  %v153_v38 = vld [vmem:[#allocation0 + $0x6f] ss:$-1 sm:$0xff]  ;;  %v167_v39 = vld [vmem:[#allocation0 + $0x7f] ss:$-1 sm:$0xff] }
   0xe   :  { %116 = vst.msk [vmem:[#allocation1 + $0x18] sm:$0xff] %vm73_vm0, %v112_v33  ;;  %v154_v40 = vrot.slane %v153_v38, 1  ;;  %v168_v41 = vrot.slane %v167_v39, 1  ;;  %130 = vst.msk [vmem:[#allocation1 + $0x20] sm:$0xff] %vm73_vm0, %v126_v36 }
   0xf   :  { %144 = vst.msk [vmem:[#allocation1 + $0x28] sm:$0xff] %vm73_vm0, %v140_v37 }
  0x10   :  { %158 = vst.msk [vmem:[#allocation1 + $0x30] sm:$0xff] %vm73_vm0, %v154_v40  ;;  %172 = vst.msk [vmem:[#allocation1 + $0x38] sm:$0xff] %vm73_vm0, %v168_v41 }
  0x13   :  { %v214_v42 = vld [vmem:[#allocation1] sm:$0xff]  ;;  %v216_v43 = vld [vmem:[#allocation1 + $0x8] sm:$0xff] }
  0x14   :  { %v218_v44 = vld [vmem:[#allocation1 + $0x10] sm:$0xff]  ;;  %215 = vst [vmem:[%s330_s1] sm:$0xff] %v214_v42  ;;  %217 = vst [vmem:[%s330_s1 + $0x8] sm:$0xff] %v216_v43 }
  0x15   :  { %219 = vst [vmem:[%s330_s1 + $0x10] sm:$0xff] %v218_v44  ;;  %v220_v45 = vld [vmem:[#allocation1 + $0x18] sm:$0xff]  ;;  %v222_v46 = vld [vmem:[#allocation1 + $0x20] sm:$0xff] }
  0x16   :  { %221 = vst [vmem:[%s330_s1 + $0x18] sm:$0xff] %v220_v45  ;;  %v224_v47 = vld [vmem:[#allocation1 + $0x28] sm:$0xff]  ;;  %223 = vst [vmem:[%s330_s1 + $0x20] sm:$0xff] %v222_v46 }
  0x17   :  { %225 = vst [vmem:[%s330_s1 + $0x28] sm:$0xff] %v224_v47  ;;  %v226_v48 = vld [vmem:[#allocation1 + $0x30] sm:$0xff]  ;;  %v228_v49 = vld [vmem:[#allocation1 + $0x38] sm:$0xff] }
  0x18   :  { %227 = vst [vmem:[%s330_s1 + $0x30] sm:$0xff] %v226_v48  ;;  %229 = vst [vmem:[%s330_s1 + $0x38] sm:$0xff] %v228_v49 }

</bundles_post_ra>
